<compile_context>
chip_gen: v5e
topology: v5e:2x2
jax: 0.10.0
libtpu: 0.0.40
codegen_flags: <defaults>
</compile_context>

<pallas_src>
import functools

import jax
import jax.numpy as jnp
from jax.experimental import pallas as pl
from jax.experimental.pallas import tpu as pltpu


def _nce_kernel(q_ref, k_ref, loss_ref, qn_sc, m_sc, d_sc, lpos_sc, *, inv_temp, mm_dtype):
    # q_ref:   (1, dim, TQ) -- queries on lanes (natural channel-major view, no wrapper transpose)
    # k_ref:   (1, dim, TK) -- keys on lanes (ditto); TK == TQ == T
    # loss_ref:(1, 1, TQ)   -- lane-dense per-query loss row
    # qn_sc:   (dim, TQ) f32 -- L1-normalized, temperature-folded query tile (lives across kt)
    # m_sc/d_sc/lpos_sc: (1, TQ) f32 -- running max / running sumexp / positive logit
    qt = pl.program_id(1)
    kt = pl.program_id(2)
    nk = pl.num_programs(2)

    # Hoist all query-side work out of the key loop: the q block index is constant over kt, so the
    # tile is DMA'd once per (b, qt); normalize / scale it once as well.
    @pl.when(kt == 0)
    def _():
        q = q_ref[0].astype(jnp.float32)                                   # (dim, TQ)
        # F.normalize(p=1): x / clamp_min(||x||_1, 1e-12); divide -> reciprocal (EUP) * VPU mult.
        qden = jnp.maximum(jnp.sum(jnp.abs(q), axis=0, keepdims=True), 1e-12)
        qn_sc[...] = q * (pl.reciprocal(qden, approx=False) * inv_temp)
        m_sc[...] = jnp.full_like(m_sc, -jnp.inf)
        d_sc[...] = jnp.zeros_like(d_sc)

    k = k_ref[0].astype(jnp.float32)                                       # (dim, TK)
    kden = jnp.maximum(jnp.sum(jnp.abs(k), axis=0, keepdims=True), 1e-12)
    kn = k * pl.reciprocal(kden, approx=False)

    qn = qn_sc[...]                                                        # (dim, TQ), f32

    # Positive logit = (qn . kn)/T for matching patch indices; on the diagonal tile this is a cheap
    # elementwise mul + sublane reduce over (dim, T) instead of a T x T eye mask.
    @pl.when(kt == qt)
    def _():
        lpos_sc[...] = jnp.sum(qn * kn, axis=0, keepdims=True)             # (1, TQ)

    # Similarity tile: contract the sublane (dim) axis of both lane-dense tiles.
    # S[k, q] = sum_d kn[d, k] * qn[d, q]  ->  (TK, TQ): keys on sublanes, queries on lanes.
    s = jax.lax.dot_general(
        kn.astype(mm_dtype), qn.astype(mm_dtype),
        dimension_numbers=(((0,), (0,)), ((), ())),
        preferred_element_type=jnp.float32,
    )

    # Online logsumexp over the key axis. The diagonal is intentionally NOT masked to -inf:
    # exp(S_ii) is exactly the exp(l_pos) column of the reference logits.
    s_max = jnp.max(s, axis=0, keepdims=True)                              # (1, TQ)
    m_prev = m_sc[...]
    m_new = jnp.maximum(m_prev, s_max)
    d_sc[...] = d_sc[...] * jnp.exp(m_prev - m_new) + jnp.sum(
        jnp.exp(s - m_new), axis=0, keepdims=True)
    m_sc[...] = m_new

    @pl.when(kt == nk - 1)
    def _():
        # Per-query loss = logsumexp_j(S_ij) - l_pos_i, stored as a lane-dense (1, TQ) row.
        loss_ref[0] = m_sc[...] + jnp.log(d_sc[...]) - lpos_sc[...]


def contrastive_loss_sup(feat_q, feat_k, temperature=0.07, base_temperature=0.07):
    # base_temperature is accepted but unused, matching the reference forward pass.
    assert feat_q.shape == feat_k.shape, (feat_q.shape, feat_k.shape)
    B = feat_q.shape[0]
    dim = feat_q.shape[1]

    # Both views are free reshapes (channel-major); no transpose, no dtype pre-cast in XLA.
    q = feat_q.reshape(B, dim, -1)
    k = feat_k.reshape(B, dim, -1)
    N = q.shape[2]

    itemsize = jnp.dtype(feat_q.dtype).itemsize
    # bf16 inputs keep bf16 MXU operands (f32 accumulate) on v6e/v7x; everything else stays f32.
    mm_dtype = jnp.bfloat16 if feat_q.dtype == jnp.bfloat16 else jnp.float32

    # Symmetric query/key tile: largest multiple of 128 dividing N whose per-step live VMEM
    # (S tile + exp temp + double-buffered q/k blocks + scratch) stays inside a v7x-safe budget.
    def vmem_estimate(t):
        dim_p = max(dim, 8)
        sim = 2 * t * t * 4                           # S tile + exp(S - m) temp (f32)
        tiles = 2 * 2 * dim_p * t * itemsize          # double-buffered q and k input blocks
        scratch = dim_p * t * 4 + 3 * 8 * t * 4       # qn scratch + (m, d, lpos) rows (padded)
        out = 2 * 8 * t * 4                           # double-buffered output row (padded)
        return sim + tiles + scratch + out

    budget = 32 * 1024 * 1024                         # headroom inside v7x's 64 MiB VMEM per TC
    T = N
    cand = min(1024, (N // 128) * 128)
    while cand >= 128:
        if N % cand == 0 and vmem_estimate(cand) <= budget:
            T = cand
            break
        cand -= 128
    # TODO(synk): pad + mask ragged N (not a multiple of 128); today it falls back to T = N.
    n_tiles = N // T

    per_row_loss = pl.pallas_call(
        functools.partial(_nce_kernel, inv_temp=float(1.0 / temperature), mm_dtype=mm_dtype),
        out_shape=jax.ShapeDtypeStruct((B, 1, N), jnp.float32),
        grid=(B, n_tiles, n_tiles),
        in_specs=[
            pl.BlockSpec((1, dim, T), lambda b, qt, kt: (b, 0, qt)),   # q tile (lane-dense)
            pl.BlockSpec((1, dim, T), lambda b, qt, kt: (b, 0, kt)),   # k tile (lane-dense)
        ],
        out_specs=pl.BlockSpec((1, 1, T), lambda b, qt, kt: (b, 0, qt)),
        scratch_shapes=[
            pltpu.VMEM((dim, T), jnp.float32),   # normalized + temperature-folded q tile
            pltpu.VMEM((1, T), jnp.float32),     # running max
            pltpu.VMEM((1, T), jnp.float32),     # running sum of exp
            pltpu.VMEM((1, T), jnp.float32),     # positive logit
        ],
        compiler_params=pltpu.CompilerParams(
            # Key-tile reduction axis last ("arbitrary"); batch / query tiles parallel so both
            # v7x TensorCores get work.
            dimension_semantics=("parallel", "parallel", "arbitrary"),
            # Tile selection budgets to ~32 MiB live; 48 MiB limit is safe on v5e/v6e/v7x.
            vmem_limit_bytes=48 * 1024 * 1024,
        ),
        cost_estimate=pl.CostEstimate(
            flops=int(2 * B * N * N * dim),
            transcendentals=int(B * N * N),
            bytes_accessed=int(B * dim * N * itemsize * (1 + n_tiles) + B * N * 4),
        ),
    )(q, k)

    # CrossEntropyLoss default reduction='mean' over the B*N rows.
    return jnp.mean(per_row_loss)


def _reference_loss(feat_q, feat_k, temperature=0.07):
    # Pure-JAX mirror of the PyTorch forward, for self-check.
    B, dim = feat_q.shape[0], feat_q.shape[1]
    q = jnp.transpose(feat_q.reshape(B, dim, -1), (0, 2, 1)).astype(jnp.float32)
    k = jnp.transpose(feat_k.reshape(B, dim, -1), (0, 2, 1)).astype(jnp.float32)
    q = q / jnp.maximum(jnp.sum(jnp.abs(q), -1, keepdims=True), 1e-12)
    k = k / jnp.maximum(jnp.sum(jnp.abs(k), -1, keepdims=True), 1e-12)
    l_pos = jnp.sum(q * k, -1).reshape(-1, 1)
    s = jnp.einsum('bnd,bmd->bnm', q, k)
    N = s.shape[1]
    s = jnp.where(jnp.eye(N, dtype=bool)[None], -jnp.inf, s)
    out = jnp.concatenate([l_pos, s.reshape(-1, N)], axis=1) / temperature
    lse = jax.nn.logsumexp(out, axis=1)
    return jnp.mean(lse - out[:, 0])


if __name__ == "__main__":
    # Primary check: batch=2, channels=4, spatial=16x16 -> N=256 patches (single key/query tile).
    key = jax.random.PRNGKey(0)
    kq, kk = jax.random.split(key)
    feat_q = jax.random.normal(kq, (2, 4, 16, 16), dtype=jnp.float32)
    feat_k = jax.random.normal(kk, (2, 4, 16, 16), dtype=jnp.float32)

    loss = jax.block_until_ready(contrastive_loss_sup(feat_q, feat_k))
    ref = jax.block_until_ready(_reference_loss(feat_q, feat_k))
    assert jnp.allclose(loss, ref, rtol=1e-5, atol=1e-5), (loss, ref)

    # Secondary check exercising the multi-tile online-logsumexp path
    # (N = 16*96 = 1536 -> T = 768, a 2x2 grid of key/query tiles per batch).
    kq2, kk2 = jax.random.split(jax.random.PRNGKey(1))
    feat_q2 = jax.random.normal(kq2, (2, 4, 16, 96), dtype=jnp.float32)
    feat_k2 = jax.random.normal(kk2, (2, 4, 16, 96), dtype=jnp.float32)
    loss2 = jax.block_until_ready(contrastive_loss_sup(feat_q2, feat_k2))
    ref2 = jax.block_until_ready(_reference_loss(feat_q2, feat_k2))
    assert jnp.allclose(loss2, ref2, rtol=1e-5, atol=1e-5), (loss2, ref2)

    print("KERNEL_OK")
</pallas_src>

<mosaic_0001>
module attributes {stable_mosaic.version = 11 : i64} {
  func.func @_nce_kernel(%arg0: i32, %arg1: i32, %arg2: i32, %arg3: memref<1x4x256xf32, #tpu.memory_space<vmem>>, %arg4: memref<1x4x256xf32, #tpu.memory_space<vmem>>, %arg5: memref<1x1x256xf32, #tpu.memory_space<vmem>>, %arg6: memref<4x256xf32, #tpu.memory_space<vmem>>, %arg7: memref<1x256xf32, #tpu.memory_space<vmem>>, %arg8: memref<1x256xf32, #tpu.memory_space<vmem>>, %arg9: memref<1x256xf32, #tpu.memory_space<vmem>>) attributes {dimension_semantics = [#tpu.dimension_semantics<parallel>, #tpu.dimension_semantics<parallel>, #tpu.dimension_semantics<arbitrary>], iteration_bounds = array<i64: 2, 1, 1>, scalar_prefetch = 0 : i64, scratch_operands = 4 : i64, tpu.core_type = #tpu.core_type<tc>, window_params = [{transform_indices = @transform_0, window_bounds = array<i64: 1, 4, 256>}, {transform_indices = @transform_1, window_bounds = array<i64: 1, 4, 256>}, {transform_indices = @transform_2, window_bounds = array<i64: 1, 1, 256>}]} {
    %c0_i32 = arith.constant 0 : i32
    %0 = arith.cmpi eq, %arg2, %c0_i32 : i32
    %1 = arith.extui %0 : i1 to i32
    %c0_i32_0 = arith.constant 0 : i32
    %2 = arith.cmpi ne, %1, %c0_i32_0 : i32
    scf.if %2 {
      %c0_20 = arith.constant 0 : index
      %c0_21 = arith.constant 0 : index
      %c0_22 = arith.constant 0 : index
      %37 = vector.load %arg3[%c0_20, %c0_21, %c0_22] : memref<1x4x256xf32, #tpu.memory_space<vmem>>, vector<1x4x256xf32>
      %38 = vector.shape_cast %37 : vector<1x4x256xf32> to vector<4x256xf32>
      %39 = math.absf %38 : vector<4x256xf32>
      %cst_23 = arith.constant dense<0.000000e+00> : vector<256xf32>
      %40 = vector.multi_reduction <add>, %39, %cst_23 [0] : vector<4x256xf32> to vector<256xf32>
      %41 = vector.shape_cast %40 : vector<256xf32> to vector<1x256xf32>
      %cst_24 = arith.constant 9.99999996E-13 : f32
      %42 = vector.broadcast %cst_24 : f32 to vector<1x256xf32>
      %43 = arith.maximumf %41, %42 : vector<1x256xf32>
      %44 = tpu.reciprocal %43 : vector<1x256xf32> -> vector<1x256xf32>
      %cst_25 = arith.constant 14.2857141 : f32
      %45 = vector.broadcast %cst_25 : f32 to vector<1x256xf32>
      %46 = arith.mulf %44, %45 : vector<1x256xf32>
      %47 = vector.broadcast %46 : vector<1x256xf32> to vector<4x256xf32>
      %48 = arith.mulf %38, %47 : vector<4x256xf32>
      %c0_26 = arith.constant 0 : index
      %c0_27 = arith.constant 0 : index
      %49 = vector.load %arg6[%c0_26, %c0_27] : memref<4x256xf32, #tpu.memory_space<vmem>>, vector<4x256xf32>
      tpu.vector_store %arg6[%c0_26, %c0_27], %48 {strides = array<i32>} : memref<4x256xf32, #tpu.memory_space<vmem>>, vector<4x256xf32>,
      %cst_28 = arith.constant 0xFF800000 : f32
      %50 = vector.broadcast %cst_28 : f32 to vector<1x256xf32>
      %c0_29 = arith.constant 0 : index
      %c0_30 = arith.constant 0 : index
      %51 = vector.load %arg7[%c0_29, %c0_30] : memref<1x256xf32, #tpu.memory_space<vmem>>, vector<1x256xf32>
      tpu.vector_store %arg7[%c0_29, %c0_30], %50 {strides = array<i32>} : memref<1x256xf32, #tpu.memory_space<vmem>>, vector<1x256xf32>,
      %cst_31 = arith.constant 0.000000e+00 : f32
      %52 = vector.broadcast %cst_31 : f32 to vector<1x256xf32>
      %c0_32 = arith.constant 0 : index
      %c0_33 = arith.constant 0 : index
      %53 = vector.load %arg8[%c0_32, %c0_33] : memref<1x256xf32, #tpu.memory_space<vmem>>, vector<1x256xf32>
      tpu.vector_store %arg8[%c0_32, %c0_33], %52 {strides = array<i32>} : memref<1x256xf32, #tpu.memory_space<vmem>>, vector<1x256xf32>,
    } else {
    }
    %c0 = arith.constant 0 : index
    %c0_1 = arith.constant 0 : index
    %c0_2 = arith.constant 0 : index
    %3 = vector.load %arg4[%c0, %c0_1, %c0_2] : memref<1x4x256xf32, #tpu.memory_space<vmem>>, vector<1x4x256xf32>
    %4 = vector.shape_cast %3 : vector<1x4x256xf32> to vector<4x256xf32>
    %5 = math.absf %4 : vector<4x256xf32>
    %cst = arith.constant dense<0.000000e+00> : vector<256xf32>
    %6 = vector.multi_reduction <add>, %5, %cst [0] : vector<4x256xf32> to vector<256xf32>
    %7 = vector.shape_cast %6 : vector<256xf32> to vector<1x256xf32>
    %cst_3 = arith.constant 9.99999996E-13 : f32
    %8 = vector.broadcast %cst_3 : f32 to vector<1x256xf32>
    %9 = arith.maximumf %7, %8 : vector<1x256xf32>
    %10 = tpu.reciprocal %9 : vector<1x256xf32> -> vector<1x256xf32>
    %11 = vector.broadcast %10 : vector<1x256xf32> to vector<4x256xf32>
    %12 = arith.mulf %4, %11 : vector<4x256xf32>
    %c0_4 = arith.constant 0 : index
    %c0_5 = arith.constant 0 : index
    %13 = vector.load %arg6[%c0_4, %c0_5] : memref<4x256xf32, #tpu.memory_space<vmem>>, vector<4x256xf32>
    %14 = arith.cmpi eq, %arg2, %arg1 : i32
    %15 = arith.extui %14 : i1 to i32
    %c0_i32_6 = arith.constant 0 : i32
    %16 = arith.cmpi ne, %15, %c0_i32_6 : i32
    scf.if %16 {
      %37 = arith.mulf %13, %12 : vector<4x256xf32>
      %cst_20 = arith.constant dense<0.000000e+00> : vector<256xf32>
      %38 = vector.multi_reduction <add>, %37, %cst_20 [0] : vector<4x256xf32> to vector<256xf32>
      %39 = vector.shape_cast %38 : vector<256xf32> to vector<1x256xf32>
      %c0_21 = arith.constant 0 : index
      %c0_22 = arith.constant 0 : index
      %40 = vector.load %arg9[%c0_21, %c0_22] : memref<1x256xf32, #tpu.memory_space<vmem>>, vector<1x256xf32>
      tpu.vector_store %arg9[%c0_21, %c0_22], %39 {strides = array<i32>} : memref<1x256xf32, #tpu.memory_space<vmem>>, vector<1x256xf32>,
    } else {
    }
    %cst_7 = arith.constant dense<0.000000e+00> : vector<256x256xf32>
    %17 = tpu.matmul %12, %13, %cst_7 {dimension_numbers = #tpu.dot_dimension_numbers<[0], [0], [1], [1], [0, 1, 1, 1], [], []>} : vector<4x256xf32>, vector<4x256xf32>, vector<256x256xf32> -> vector<256x256xf32>
    %cst_8 = arith.constant dense<0xFF800000> : vector<256xf32>
    %18 = vector.multi_reduction <maximumf>, %17, %cst_8 [0] : vector<256x256xf32> to vector<256xf32>
    %19 = vector.shape_cast %18 : vector<256xf32> to vector<1x256xf32>
    %c0_9 = arith.constant 0 : index
    %c0_10 = arith.constant 0 : index
    %20 = vector.load %arg7[%c0_9, %c0_10] : memref<1x256xf32, #tpu.memory_space<vmem>>, vector<1x256xf32>
    %21 = arith.maximumf %20, %19 : vector<1x256xf32>
    %c0_11 = arith.constant 0 : index
    %c0_12 = arith.constant 0 : index
    %22 = vector.load %arg8[%c0_11, %c0_12] : memref<1x256xf32, #tpu.memory_space<vmem>>, vector<1x256xf32>
    %23 = arith.subf %20, %21 : vector<1x256xf32>
    %24 = math.exp %23 : vector<1x256xf32>
    %25 = arith.mulf %22, %24 : vector<1x256xf32>
    %26 = vector.broadcast %21 : vector<1x256xf32> to vector<256x256xf32>
    %27 = arith.subf %17, %26 : vector<256x256xf32>
    %28 = math.exp %27 : vector<256x256xf32>
    %cst_13 = arith.constant dense<0.000000e+00> : vector<256xf32>
    %29 = vector.multi_reduction <add>, %28, %cst_13 [0] : vector<256x256xf32> to vector<256xf32>
    %30 = vector.shape_cast %29 : vector<256xf32> to vector<1x256xf32>
    %31 = arith.addf %25, %30 : vector<1x256xf32>
    %c0_14 = arith.constant 0 : index
    %c0_15 = arith.constant 0 : index
    %32 = vector.load %arg8[%c0_14, %c0_15] : memref<1x256xf32, #tpu.memory_space<vmem>>, vector<1x256xf32>
    tpu.vector_store %arg8[%c0_14, %c0_15], %31 {strides = array<i32>} : memref<1x256xf32, #tpu.memory_space<vmem>>, vector<1x256xf32>,
    %c0_16 = arith.constant 0 : index
    %c0_17 = arith.constant 0 : index
    %33 = vector.load %arg7[%c0_16, %c0_17] : memref<1x256xf32, #tpu.memory_space<vmem>>, vector<1x256xf32>
    tpu.vector_store %arg7[%c0_16, %c0_17], %21 {strides = array<i32>} : memref<1x256xf32, #tpu.memory_space<vmem>>, vector<1x256xf32>,
    %c0_i32_18 = arith.constant 0 : i32
    %34 = arith.cmpi eq, %arg2, %c0_i32_18 : i32
    %35 = arith.extui %34 : i1 to i32
    %c0_i32_19 = arith.constant 0 : i32
    %36 = arith.cmpi ne, %35, %c0_i32_19 : i32
    scf.if %36 {
      %c0_20 = arith.constant 0 : index
      %c0_21 = arith.constant 0 : index
      %37 = vector.load %arg7[%c0_20, %c0_21] : memref<1x256xf32, #tpu.memory_space<vmem>>, vector<1x256xf32>
      %c0_22 = arith.constant 0 : index
      %c0_23 = arith.constant 0 : index
      %38 = vector.load %arg8[%c0_22, %c0_23] : memref<1x256xf32, #tpu.memory_space<vmem>>, vector<1x256xf32>
      %39 = math.log %38 : vector<1x256xf32>
      %40 = arith.addf %37, %39 : vector<1x256xf32>
      %c0_24 = arith.constant 0 : index
      %c0_25 = arith.constant 0 : index
      %41 = vector.load %arg9[%c0_24, %c0_25] : memref<1x256xf32, #tpu.memory_space<vmem>>, vector<1x256xf32>
      %42 = arith.subf %40, %41 : vector<1x256xf32>
      %c0_26 = arith.constant 0 : index
      %c0_27 = arith.constant 0 : index
      %c0_28 = arith.constant 0 : index
      %43 = vector.load %arg5[%c0_26, %c0_27, %c0_28] : memref<1x1x256xf32, #tpu.memory_space<vmem>>, vector<1x1x256xf32>
      %44 = vector.shape_cast %43 : vector<1x1x256xf32> to vector<1x256xf32>
      %45 = vector.shape_cast %42 : vector<1x256xf32> to vector<1x1x256xf32>
      tpu.vector_store %arg5[%c0_26, %c0_27, %c0_28], %45 {strides = array<i32>} : memref<1x1x256xf32, #tpu.memory_space<vmem>>, vector<1x1x256xf32>,
    } else {
    }
    return
  }
  func.func @transform_0(%arg0: i32, %arg1: i32, %arg2: i32) -> (i32, i32, i32) {
    %c0_i32 = arith.constant 0 : i32
    %c0_i32_0 = arith.constant 0 : i32
    return %arg0, %c0_i32, %arg1 : i32, i32, i32
  }
  func.func @transform_1(%arg0: i32, %arg1: i32, %arg2: i32) -> (i32, i32, i32) {
    %c0_i32 = arith.constant 0 : i32
    %c0_i32_0 = arith.constant 0 : i32
    return %arg0, %c0_i32, %arg2 : i32, i32, i32
  }
  func.func @transform_2(%arg0: i32, %arg1: i32, %arg2: i32) -> (i32, i32, i32) {
    %c0_i32 = arith.constant 0 : i32
    %c0_i32_0 = arith.constant 0 : i32
    return %arg0, %c0_i32, %arg1 : i32, i32, i32
  }
}

</mosaic_0001>

<bundles_post_ra>
// kernel: tpu_custom_call.1
= control target key start
LH: loop header
LB: loop body
LE: loop exit
PB: predicated region body
PF: predicated region fallthrough
CT: control target
= control target key end

     0   :  { %7 = vsyncpa [#allocation7], 0  ;;  %s2359_s0 = inlined_call_operand.hbm [shape: f32[2,4,256], index: 0, kind: input, shape index: {}]   ;;  %s2360_s1 = inlined_call_operand.hbm [shape: f32[2,4,256], index: 1, kind: input, shape index: {}]   ;;  %s2361_s2 = inlined_call_operand.hbm [shape: f32[2,1,256], index: 2, kind: output, shape index: {}]  }
   0x1   :  { %9 = vsyncpa [#allocation7 + $0x1], 0 }
   0x2   :  { %10 = vsyncpa [#allocation10], 0 }
   0x3   :  { %12 = vsyncpa [#allocation10 + $0x1], 0 }
   0x4   :  { %13 = vsyncpa [#allocation8], 0 }
   0x5   :  { %15 = vsyncpa [#allocation8 + $0x1], 0  ;;  %s1776_s9 = smov 0   ;;  %s1778_s10 = smov 0  }
   0x6   :  { %s1780_s11 = smov 0   ;;  %s1782_s12 = smov 0  }
   0x7   :  { %s1784_s13 = smov 0   ;;  %s1786_s14 = smov 0  }
   0x8 LB: > { %s1314_s15 = sadd.s32 4294967295, %s1757_s14   ;;  %s1315_s16 = sadd.s32 4294967294, %s1757_s14   ;;  %s1757_s14 = sphi %s1786_s14, %s21_s14   ;;  %s1753_s13 = sphi %s1784_s13, %s2443_s13   ;;  %s1749_s12 = sphi %s1782_s12, %s2442_s12   ;;  %s1745_s11 = sphi %s1780_s11, %s2441_s11   ;;  %s1741_s10 = sphi %s1778_s10, %s2440_s10   ;;  %s1737_s9 = sphi %s1776_s9, %s2439_s9  }
   0x9   : > { %s40_s17 = sadd.s32 1, %s1753_s13  ;;  %s49_s18 = sadd.s32 1, %s1745_s11 }
   0xa   : > { %p42_p0 = scmp.ge.s32.totalorder %s40_s17, 2  ;;  %p56_p1 = scmp.ne.s32.totalorder %s1745_s11, %s1741_s10 }
   0xb   : > { %p57_p2 = scmp.eq.s32.totalorder %s1757_s14, 0  ;;  %p62_p3 = scmp.ne.s32.totalorder %s1741_s10, %s1737_s9 }
   0xc   : > { %s2445_s17 = smov (%p42_p0, %s40_s17), 0  ;;  %p63_p5 = scmp.eq.s32.totalorder %s1314_s15, 0 }
   0xd   : > { %p1817_p4 = por %p57_p2, %p56_p1  ;;  %s44_s20 = ssub.s32 %s1753_s13, %s2445_s17 }
   0xe   : > { %p116_p6 = scmp.eq.s32.totalorder %s1314_s15, 1  ;;  %p47_p7 = scmp.eq.s32.totalorder %s44_s20, 0 }
   0xf   : > { %p1823_p8 = por %p63_p5, %p62_p3  ;;  %p122_p10 = scmp.eq.s32.totalorder %s1315_s16, 1 }
  0x10   : > { %p1827_p9 = por %p116_p6, %p56_p1  ;;  %p1317_p12 = scmp.ge.s32.totalorder %s1757_s14, 2 }
  0x11   : > { %s1832_s23 = scalar_select %p47_p7, %s1745_s11, %s49_s18  }
  0x12   : > { %p1834_p11 = por %p122_p10, %p62_p3  ;;  %p1419_p13 = scmp.lt.s32.totalorder %s1757_s14, 2 }
  0x13   : > { %s142_s25 = sand.u32 1, %s1745_s11   ;;  %s1398_s27 = sshll.u32 %s1753_s13, 3 }
  0x14   : > { %s1318_s26 = sshll.u32 %s142_s25, 3  ;;  %s153_s30 = scalar_lea.hbm %s2359_s0, %s1398_s27 }
  0x15   : > { %s146_s3 = scalar_lea.vmem [#allocation6], %s1318_s26  ;;  %s155_s5 = sshll.u32 %s153_s30, 4  ;;  %s156_s5 = int_to_ptr.hbm [resolvable:$true] %s155_s5 }
  0x16   : > { %s157_s4 = sshll.u32 %s146_s3, 4  ;;  %p1409_p0 = pnand %p1419_p13, %p1817_p4  ;;  %s158_s4 = int_to_ptr.vmem [resolvable:$true] %s157_s4 }
  0x17   : > { %p1324_p1 = scmp.ge.s32.totalorder %s1757_s14, 1  ;;  %p184_p2 = scmp.lt.s32.totalorder %s1757_s14, 3 }
  0x18   : > { %s143_s6 = scalar_lea.sflag [#allocation7], %s142_s25  ;;  %s175_s15 = scalar_lea.hbm %s2360_s1, %s1398_s27 }
  0x19   : > { %1411 = dma.hbm_to_vmem [thread:$0]  (!%p1409_p0), %s156_s5, 128, %s158_s4, %s143_s6  }
  0x1a   : > { %p185_p3 = pnand %p1324_p1, %p184_p2  ;;  %s168_s16 = scalar_lea.vmem [#allocation9], %s1318_s26 }
  0x1b   : > { %s179_s18 = sshll.u32 %s168_s16, 4  ;;  %s177_s20 = sshll.u32 %s175_s15, 4  ;;  %s180_s18 = int_to_ptr.vmem [resolvable:$true] %s179_s18  ;;  %s178_s20 = int_to_ptr.hbm [resolvable:$true] %s177_s20 }
  0x1c   : > { %s165_s28 = scalar_lea.sflag [#allocation10], %s142_s25  ;;  %188 = sbr.rel (%p185_p3) target bundleno = 802 (0x322), region = 28 }
  0x1d   : > { %1414 = dma.hbm_to_vmem [thread:$0]  (!%p1409_p0), %s178_s20, 128, %s180_s18, %s165_s28  }
  0x21   : > { %s1853_s19 = sand.u32 1, %s1741_s10  }
  0x22   : > { %s1325_s29 = sshll.u32 %s1853_s19, 3  ;;  %s191_s30 = scalar_lea.sflag [#allocation7], %s1853_s19 }
  0x23   : > { %s194_s3 = scalar_lea.vmem [#allocation6], %s1325_s29 }
  0x24   : > { %1724 = dma.done.wait (%p1823_p8), %s191_s30, 128  }
  0x25   : > { %1726 = vsyncadd (%p1823_p8), %s191_s30, 4294967168  ;;  %s201_s26 = scalar_lea.sflag [#allocation10], %s1853_s19  ;;  %s204_s25 = scalar_lea.vmem [#allocation9], %s1325_s29 }
  0x26   : > { %1728 = dma.done.wait (%p1823_p8), %s201_s26, 128  }
  0x27   : > { %1730 = vsyncadd (%p1823_p8), %s201_s26, 4294967168  ;;  %v1866_v0 = vld [vmem:[%s194_s3] sm:$0xff]  ;;  %v1869_v2 = vld [vmem:[%s204_s25] sm:$0xff]  ;;  %vm246_vm0 = vcmask 1043456   ;;  %s1327_s21 = sshll.u32 %s1853_s19, 1  ;;  %s1395_s27 = sshll.u32 %s1749_s12, 1 }
  0x28   : > { %v239_v1 = vand.u32 2147483647, %v1866_v0  ;;  %v307_v3 = vand.u32 2147483647, %v1869_v2  ;;  %s1197_s6 = scalar_lea.hbm %s2361_s2, %s1395_s27  ;;  %s230_s7 = scalar_lea.vmem [#allocation11], %s1327_s21 }
  0x29   : > { %s1199_s8 = sshll.u32 %s230_s7, 4  ;;  %s1201_s15 = sshll.u32 %s1197_s6, 4  ;;  %s1200_s8 = int_to_ptr.vmem [resolvable:$true] %s1199_s8  ;;  %s1202_s15 = int_to_ptr.hbm [resolvable:$true] %s1201_s15 }
  0x2a   : > { %241 = vst [vmem:[#allocation1] ss:$2 sm:$0xff] %v239_v1  ;;  %s1185_s12 = scalar_lea.sflag [#allocation8], %s1853_s19  ;;  %s1685_s16 = sshra.s32 %s1202_s15, 4  ;;  %s1686_s16 = int_to_ptr.hbm [resolvable:$true] %s1685_s16 }
  0x2b   : > { %s1687_s18 = scalar_lea.hbm %s1686_s16, 2  ;;  %s1691_s29 = scalar_lea.hbm %s2361_s2, 4 }
  0x2c   : > { %p1688_p4 = scmp.ne.s32.totalorder %s1686_s16, %s1687_s18  ;;  %p1692_p7 = scmp.lt.s32.totalorder %s1686_s16, %s2361_s2 }
  0x2d   : > { %p1693_p8 = scmp.lt.s32.totalorder %s1691_s29, %s1687_s18 }
  0x2e   : > { %p1689_p5 = pnand %p1688_p4, %p1827_p9 }
  0x2f   : > { %p1694_p10 = por %p1693_p8, %p1692_p7 }
  0x30   : > { %p1690_p6 = pneg %p1689_p5 }
  0x31   : > { %v242_v4 = vld.sshfl [vmem:[#allocation1] sm:$0xff pattern:$0x75316420]  ;;  %v243_v5 = vld.sshfl [vmem:[#allocation1 + $0x8] sm:$0xff pattern:$0x75316420] }
  0x32   : > { %v247_v6 = vsel %vm246_vm0, %v242_v4, 0.0  ;;  %v254_v7 = vsel %vm246_vm0, %v243_v5, 0.0  ;;  %309 = vst [vmem:[#allocation1] ss:$2 sm:$0xff] %v307_v3  ;;  %p1695_p13 = pnand %p1694_p10, %p1690_p6 }
  0x33   : > { %v248_v8 = vrot.slane %v247_v6, 4  ;;  %v255_v9 = vrot.slane %v254_v7, 4 }
  0x35   : > { %v249_v10 = vadd.f32 %v248_v8, %v247_v6  ;;  %v256_v11 = vadd.f32 %v255_v9, %v254_v7 }
  0x37   : > { %v250_v12 = vrot.slane %v249_v10, 2  ;;  %v257_v13 = vrot.slane %v256_v11, 2 }
  0x39   : > { %v251_v14 = vadd.f32 %v250_v12, %v249_v10  ;;  %v258_v15 = vadd.f32 %v257_v13, %v256_v11  ;;  %v310_v16 = vld.sshfl [vmem:[#allocation1] sm:$0xff pattern:$0x75316420]  ;;  %v311_v17 = vld.sshfl [vmem:[#allocation1 + $0x8] sm:$0xff pattern:$0x75316420] }
  0x3a   : > { %v315_v18 = vsel %vm246_vm0, %v310_v16, 0.0  ;;  %v322_v19 = vsel %vm246_vm0, %v311_v17, 0.0 }
  0x3b   : > { %v252_v20 = vrot.slane %v251_v14, 1  ;;  %v259_v21 = vrot.slane %v258_v15, 1  ;;  %v316_v22 = vrot.slane %v315_v18, 4  ;;  %v323_v23 = vrot.slane %v322_v19, 4 }
  0x3d   : > { %v253_v24 = vadd.f32 %v252_v20, %v251_v14  ;;  %v260_v25 = vadd.f32 %v259_v21, %v258_v15  ;;  %v317_v26 = vadd.f32 %v316_v22, %v315_v18  ;;  %v324_v27 = vadd.f32 %v323_v23, %v322_v19 }
  0x3f   : > { %v261_v28 = vmax.f32 %v253_v24, 1e-12  ;;  %v262_v29 = vmax.f32 %v260_v25, 1e-12  ;;  %v318_v30 = vrot.slane %v317_v26, 2  ;;  %v325_v31 = vrot.slane %v324_v27, 2 }
  0x41   : > { %1471 = vrcp.f32 %v261_v28  ;;  %v319_v32 = vadd.f32 %v318_v30, %v317_v26  ;;  %v326_v33 = vadd.f32 %v325_v31, %v324_v27  ;;  %vm268_vm1 = vweird.f32 %v261_v28 }
  0x42   : > { %1473 = vrcp.f32 %v262_v29  ;;  %vm282_vm3 = vweird.f32 %v262_v29  ;;  %v288_v45 = vand.u32 2147483648, %v262_v29  ;;  %v286_v47 = vand.u32 2147483647, %v262_v29 }
  0x43   : > { %v320_v34 = vrot.slane %v319_v32, 1  ;;  %v327_v35 = vrot.slane %v326_v33, 1  ;;  %v274_v49 = vand.u32 2147483648, %v261_v28  ;;  %v272_v51 = vand.u32 2147483647, %v261_v28 }
  0x44   : > { %v289_v54 = vor.u32 1.1754944e-38, %v288_v45  ;;  %vm287_vm7 = vcmp.eq.f32.partialorder %v286_v47, 8.507059e+37 }
  0x45   : > { %v321_v37 = vadd.f32 %v320_v34, %v319_v32  ;;  %v328_v38 = vadd.f32 %v327_v35, %v326_v33  ;;  %v275_v56 = vor.u32 1.1754944e-38, %v274_v49  ;;  %vm273_vm8 = vcmp.eq.f32.partialorder %v272_v51, 8.507059e+37 }
  0x47   : > { %v1472_v36 = vpop.eup %1471  ;;  %v329_v42 = vmax.f32 %v321_v37, 1e-12  ;;  %v330_v43 = vmax.f32 %v328_v38, 1e-12 }
  0x48   : > { %v1474_v39 = vpop.eup %1473  ;;  %v264_v40 = vmul.f32 %v1472_v36, %v261_v28  ;;  %vm269_vm2 = vweird.f32 %v1472_v36 }
  0x49   : > { %v278_v41 = vmul.f32 %v1474_v39, %v262_v29  ;;  %vm283_vm4 = vweird.f32 %v1474_v39  ;;  %1475 = vrcp.f32 %v329_v42  ;;  %vm1877_vm5 = vmor %vm268_vm1, %vm269_vm2  ;;  %vm336_vm9 = vweird.f32 %v329_v42 }
  0x4a   : > { %v265_v44 = vsub.f32 1.0, %v264_v40  ;;  %1477 = vrcp.f32 %v330_v43  ;;  %vm284_vm6 = vmor %vm282_vm3, %vm283_vm4  ;;  %v340_v1 = vand.u32 2147483647, %v329_v42  ;;  %v342_v3 = vand.u32 2147483648, %v329_v42 }
  0x4b   : > { %v279_v46 = vsub.f32 1.0, %v278_v41  ;;  %v356_v7 = vand.u32 2147483648, %v330_v43  ;;  %vm350_vm11 = vweird.f32 %v330_v43  ;;  %v354_v9 = vand.u32 2147483647, %v330_v43 }
  0x4c   : > { %v266_v48 = vmul.f32 %v1472_v36, %v265_v44  ;;  %v343_v15 = vor.u32 1.1754944e-38, %v342_v3  ;;  %vm341_vm15 = vcmp.eq.f32.partialorder %v340_v1, 8.507059e+37  ;;  %vm476_vm2 = vcmask 31744  }
  0x4d   : > { %v280_v52 = vmul.f32 %v1474_v39, %v279_v46  ;;  %v357_v16 = vor.u32 1.1754944e-38, %v356_v7  ;;  %vm355_vm1 = vcmp.eq.f32.partialorder %v354_v9, 8.507059e+37 }
  0x4e   : > { %v267_v53 = vadd.f32 %v1472_v36, %v266_v48 }
  0x4f   : > { %v281_v55 = vadd.f32 %v1474_v39, %v280_v52  ;;  %v1476_v57 = vpop.eup %1475 }
  0x50   : > { %v271_v58 = vsel %vm1877_vm5, %v1472_v36, %v267_v53  ;;  %v1478_v60 = vpop.eup %1477  ;;  %v332_v62 = vmul.f32 %v1476_v57, %v329_v42  ;;  %vm337_vm10 = vweird.f32 %v1476_v57 }
  0x51   : > { %v285_v59 = vsel %vm284_vm6, %v1474_v39, %v281_v55  ;;  %v346_v4 = vmul.f32 %v1478_v60, %v330_v43  ;;  %v276_v5 = vsel %vm273_vm8, %v275_v56, %v271_v58  ;;  %vm351_vm12 = vweird.f32 %v1478_v60  ;;  %vm338_vm13 = vmor %vm336_vm9, %vm337_vm10 }
  0x52   : > { %v290_v61 = vsel %vm287_vm7, %v289_v54, %v285_v59  ;;  %v333_v6 = vsub.f32 1.0, %v332_v62  ;;  %v291_v11 = vmul.f32 14.285714, %v276_v5  ;;  %vm352_vm14 = vmor %vm350_vm11, %vm351_vm12 }
  0x53   : > { %v292_v63 = vmul.f32 14.285714, %v290_v61  ;;  %v347_v8 = vsub.f32 1.0, %v346_v4 }
  0x54   : > { %v334_v10 = vmul.f32 %v1476_v57, %v333_v6 }
  0x55   : > { %v295_v12 = vrot.slane %v292_v63, 4  ;;  %v348_v13 = vmul.f32 %v1478_v60, %v347_v8 }
  0x56   : > { %v335_v14 = vadd.f32 %v1476_v57, %v334_v10 }
  0x57   : > { %v349_v17 = vadd.f32 %v1478_v60, %v348_v13  ;;  %v296_v19 = vsel %vm246_vm0, %v291_v11, %v295_v12 }
  0x58   : > { %v339_v18 = vsel %vm338_vm13, %v1476_v57, %v335_v14  ;;  %v298_v24 = vmul.f32 %v296_v19, %v1866_v0 }
  0x59   : > { %v353_v20 = vsel %vm352_vm14, %v1478_v60, %v349_v17  ;;  %v344_v21 = vsel %vm341_vm15, %v343_v15, %v339_v18 }
  0x5a   : > { %v358_v22 = vsel %vm355_vm1, %v357_v16, %v353_v20 }
  0x5b   : > { %v361_v23 = vrot.slane %v358_v22, 4 }
  0x5d   : > { %v362_v25 = vsel %vm246_vm0, %v344_v21, %v361_v23 }
  0x5e   : > { %v364_v26 = vmul.f32 %v362_v25, %v1869_v2 }
  0x60   : > { %v370_v27 = vmul.f32 %v364_v26, %v298_v24 }
  0x62   : > { %372 = vst [vmem:[#allocation1] ss:$2 sm:$0xff] %v370_v27 }
  0x69   : > { %v1888_v28 = vld.sshfl [vmem:[#allocation1] sm:$0xff pattern:$0x75316420]  ;;  %v1890_v29 = vld.sshfl [vmem:[#allocation1 + $0x8] sm:$0xff pattern:$0x75316420] }
  0x6a   : > { %403 = vst [vmem:[#allocation1] ss:$2 sm:$0xff] %v364_v26 }
  0x71   : > { %v404_v30 = vld.sshfl [vmem:[#allocation1] sm:$0xff pattern:$0x75316420]  ;;  %v405_v31 = vld.sshfl [vmem:[#allocation1 + $0x8] sm:$0xff pattern:$0x75316420] }
  0x72   : > { %408 = vxpose.xlu0.b32.start.end [1/1] (short) %v404_v30, 128  ;;  %473 = vst [vmem:[#allocation1] ss:$2 sm:$0xff] %v298_v24 }
  0x79   : > { %v474_v32 = vld.sshfl [vmem:[#allocation1] sm:$0xff pattern:$0x75316420]  ;;  %v475_v33 = vld.sshfl [vmem:[#allocation1 + $0x8] sm:$0xff pattern:$0x75316420] }
  0x7a   : > { %1328 = vmatpush.msk.msra.mxu0 %vm246_vm0, %v474_v32  ;;  %1361 = vmatpush.msk.msra.mxu1 %vm246_vm0, %v475_v33 }
  0x7b   : > { %1400 = vmatpush.msk.msra.mxu2 %vm246_vm0, %v474_v32  ;;  %1401 = vmatpush.msk.msra.mxu3 %vm246_vm0, %v475_v33 }
  0xf2   : > { %440 = vxpose.xlu0.b32.start.end [1/1] (short) %v405_v31, 128 }
 0x116   : > { %v424_v0 = vpop.trf.xlu0 }
 0x117   : > { %1329 = vmatmul.msk.f32.vlgmr.msra.gmra.mxu0 %vm476_vm2, %v424_v0  ;;  %1362 = vmatmul.msk.f32.vlgmr.msra.gmra.mxu1 %vm476_vm2, %v424_v0 }
 0x11e   : > { %v425_v2 = vpop.trf.xlu0 }
 0x11f   : > { %1330 = vmatmul.msk.f32.gmra.mxu0 %vm476_vm2, %v425_v2  ;;  %1363 = vmatmul.msk.f32.gmra.mxu1 %vm476_vm2, %v425_v2 }
 0x126   : > { %v426_v34 = vpop.trf.xlu0 }
 0x127   : > { %1331 = vmatmul.msk.f32.gmra.mxu0 %vm476_vm2, %v426_v34  ;;  %1364 = vmatmul.msk.f32.gmra.mxu1 %vm476_vm2, %v426_v34 }
 0x12e   : > { %v427_v35 = vpop.trf.xlu0 }
 0x12f   : > { %1332 = vmatmul.msk.f32.gmra.mxu0 %vm476_vm2, %v427_v35  ;;  %1365 = vmatmul.msk.f32.gmra.mxu1 %vm476_vm2, %v427_v35 }
 0x136   : > { %v428_v36 = vpop.trf.xlu0 }
 0x137   : > { %1333 = vmatmul.msk.f32.gmra.mxu0 %vm476_vm2, %v428_v36  ;;  %1366 = vmatmul.msk.f32.gmra.mxu1 %vm476_vm2, %v428_v36 }
 0x13e   : > { %v429_v37 = vpop.trf.xlu0 }
 0x13f   : > { %1334 = vmatmul.msk.f32.gmra.mxu0 %vm476_vm2, %v429_v37  ;;  %1367 = vmatmul.msk.f32.gmra.mxu1 %vm476_vm2, %v429_v37 }
 0x146   : > { %v430_v38 = vpop.trf.xlu0 }
 0x147   : > { %1335 = vmatmul.msk.f32.gmra.mxu0 %vm476_vm2, %v430_v38  ;;  %1368 = vmatmul.msk.f32.gmra.mxu1 %vm476_vm2, %v430_v38 }
 0x14e   : > { %v431_v39 = vpop.trf.xlu0 }
 0x14f   : > { %1336 = vmatmul.msk.f32.gmra.mxu0 %vm476_vm2, %v431_v39  ;;  %1369 = vmatmul.msk.f32.gmra.mxu1 %vm476_vm2, %v431_v39 }
 0x156   : > { %v432_v40 = vpop.trf.xlu0 }
 0x157   : > { %1337 = vmatmul.msk.f32.gmra.mxu0 %vm476_vm2, %v432_v40  ;;  %1370 = vmatmul.msk.f32.gmra.mxu1 %vm476_vm2, %v432_v40 }
 0x15e   : > { %v433_v41 = vpop.trf.xlu0 }
 0x15f   : > { %1338 = vmatmul.msk.f32.gmra.mxu0 %vm476_vm2, %v433_v41  ;;  %1371 = vmatmul.msk.f32.gmra.mxu1 %vm476_vm2, %v433_v41 }
 0x166   : > { %v434_v42 = vpop.trf.xlu0 }
 0x167   : > { %1339 = vmatmul.msk.f32.gmra.mxu0 %vm476_vm2, %v434_v42  ;;  %1372 = vmatmul.msk.f32.gmra.mxu1 %vm476_vm2, %v434_v42 }
 0x16e   : > { %v435_v43 = vpop.trf.xlu0 }
 0x16f   : > { %1340 = vmatmul.msk.f32.gmra.mxu0 %vm476_vm2, %v435_v43  ;;  %1373 = vmatmul.msk.f32.gmra.mxu1 %vm476_vm2, %v435_v43 }
 0x176   : > { %v436_v44 = vpop.trf.xlu0 }
 0x177   : > { %1341 = vmatmul.msk.f32.gmra.mxu0 %vm476_vm2, %v436_v44  ;;  %1374 = vmatmul.msk.f32.gmra.mxu1 %vm476_vm2, %v436_v44 }
 0x17e   : > { %v437_v45 = vpop.trf.xlu0 }
 0x17f   : > { %1342 = vmatmul.msk.f32.gmra.mxu0 %vm476_vm2, %v437_v45  ;;  %1375 = vmatmul.msk.f32.gmra.mxu1 %vm476_vm2, %v437_v45 }
 0x186   : > { %v438_v46 = vpop.trf.xlu0 }
 0x187   : > { %1343 = vmatmul.msk.f32.gmra.mxu0 %vm476_vm2, %v438_v46  ;;  %1376 = vmatmul.msk.f32.gmra.mxu1 %vm476_vm2, %v438_v46 }
 0x18e   : > { %v439_v47 = vpop.trf.xlu0 }
 0x18f   : > { %1344 = vmatmul.msk.f32.gmra.mxu0 %vm476_vm2, %v439_v47  ;;  %1377 = vmatmul.msk.f32.gmra.mxu1 %vm476_vm2, %v439_v47 }
 0x194   : > { %v1950_v59 = vpop.f32.mrf.mxu0  ;;  %v1952_v60 = vpop.f32.mrf.mxu1 }
 0x195   : > { %2391 = vst [vmem:[#allocation15_spill] sm:$0xff] %v1952_v60 }
 0x196   : > { %v456_v48 = vpop.trf.xlu0 }
 0x197   : > { %1345 = vmatmul.msk.f32.vlgmr.msra.gmra.mxu2 %vm476_vm2, %v456_v48  ;;  %1378 = vmatmul.msk.f32.vlgmr.msra.gmra.mxu3 %vm476_vm2, %v456_v48 }
 0x19c   : > { %v1956_v62 = vpop.f32.mrf.mxu0  ;;  %v1958_v63 = vpop.f32.mrf.mxu1 }
 0x19d   : > { %2392 = vst [vmem:[#allocation16_spill] sm:$0xff] %v1956_v62 }
 0x19e   : > { %v457_v49 = vpop.trf.xlu0  ;;  %2393 = vst [vmem:[#allocation17_spill] sm:$0xff] %v1958_v63 }
 0x19f   : > { %1346 = vmatmul.msk.f32.gmra.mxu2 %vm476_vm2, %v457_v49  ;;  %1379 = vmatmul.msk.f32.gmra.mxu3 %vm476_vm2, %v457_v49 }
 0x1a4   : > { %v1962_v3 = vpop.f32.mrf.mxu0  ;;  %v1964_v4 = vpop.f32.mrf.mxu1 }
 0x1a5   : > { %2394 = vst [vmem:[#allocation18_spill] sm:$0xff] %v1962_v3 }
 0x1a6   : > { %v458_v50 = vpop.trf.xlu0  ;;  %2395 = vst [vmem:[#allocation19_spill] sm:$0xff] %v1964_v4 }
 0x1a7   : > { %1347 = vmatmul.msk.f32.gmra.mxu2 %vm476_vm2, %v458_v50  ;;  %1380 = vmatmul.msk.f32.gmra.mxu3 %vm476_vm2, %v458_v50 }
 0x1ac   : > { %v1968_v7 = vpop.f32.mrf.mxu0  ;;  %v1970_v8 = vpop.f32.mrf.mxu1 }
 0x1ad   : > { %2396 = vst [vmem:[#allocation20_spill] sm:$0xff] %v1968_v7 }
 0x1ae   : > { %v459_v51 = vpop.trf.xlu0  ;;  %2397 = vst [vmem:[#allocation21_spill] sm:$0xff] %v1970_v8 }
 0x1af   : > { %1348 = vmatmul.msk.f32.gmra.mxu2 %vm476_vm2, %v459_v51  ;;  %1381 = vmatmul.msk.f32.gmra.mxu3 %vm476_vm2, %v459_v51 }
 0x1b4   : > { %v1976_v10 = vpop.f32.mrf.mxu0  ;;  %v1978_v11 = vpop.f32.mrf.mxu1 }
 0x1b6   : > { %v460_v52 = vpop.trf.xlu0 }
 0x1b7   : > { %1349 = vmatmul.msk.f32.gmra.mxu2 %vm476_vm2, %v460_v52  ;;  %1382 = vmatmul.msk.f32.gmra.mxu3 %vm476_vm2, %v460_v52 }
 0x1bc   : > { %v1984_v14 = vpop.f32.mrf.mxu0  ;;  %v1986_v15 = vpop.f32.mrf.mxu1 }
 0x1be   : > { %v461_v53 = vpop.trf.xlu0 }
 0x1bf   : > { %1350 = vmatmul.msk.f32.gmra.mxu2 %vm476_vm2, %v461_v53  ;;  %1383 = vmatmul.msk.f32.gmra.mxu3 %vm476_vm2, %v461_v53 }
 0x1c4   : > { %v1992_v18 = vpop.f32.mrf.mxu0  ;;  %v1994_v19 = vpop.f32.mrf.mxu1 }
 0x1c5   : > { %2398 = vst [vmem:[#allocation22_spill] sm:$0xff] %v1994_v19 }
 0x1c6   : > { %v462_v54 = vpop.trf.xlu0 }
 0x1c7   : > { %1351 = vmatmul.msk.f32.gmra.mxu2 %vm476_vm2, %v462_v54  ;;  %1384 = vmatmul.msk.f32.gmra.mxu3 %vm476_vm2, %v462_v54  ;;  %v803_v54 = vmax.f32 %v1950_v59, %v1962_v3 }
 0x1cc   : > { %v2000_v22 = vpop.f32.mrf.mxu0  ;;  %v2002_v23 = vpop.f32.mrf.mxu1 }
 0x1ce   : > { %v463_v55 = vpop.trf.xlu0 }
 0x1cf   : > { %1352 = vmatmul.msk.f32.gmra.mxu2 %vm476_vm2, %v463_v55  ;;  %1385 = vmatmul.msk.f32.gmra.mxu3 %vm476_vm2, %v463_v55  ;;  %v840_v55 = vmax.f32 %v1952_v60, %v1964_v4 }
 0x1d4   : > { %v2008_v26 = vpop.f32.mrf.mxu0  ;;  %v2010_v27 = vpop.f32.mrf.mxu1 }
 0x1d5   : > { %2399 = vst [vmem:[#allocation23_spill] sm:$0xff] %v2010_v27 }
 0x1d6   : > { %v464_v56 = vpop.trf.xlu0 }
 0x1d7   : > { %1353 = vmatmul.msk.f32.gmra.mxu2 %vm476_vm2, %v464_v56  ;;  %1386 = vmatmul.msk.f32.gmra.mxu3 %vm476_vm2, %v464_v56  ;;  %v804_v56 = vmax.f32 %v1956_v62, %v1968_v7 }
 0x1dc   : > { %v2020_v0 = vpop.f32.mrf.mxu0  ;;  %v2022_v2 = vpop.f32.mrf.mxu1 }
 0x1dd   : > { %2402 = vst [vmem:[#allocation26_spill] sm:$0xff] %v2022_v2 }
 0x1de   : > { %v465_v57 = vpop.trf.xlu0 }
 0x1df   : > { %1354 = vmatmul.msk.f32.gmra.mxu2 %vm476_vm2, %v465_v57  ;;  %1387 = vmatmul.msk.f32.gmra.mxu3 %vm476_vm2, %v465_v57 }
 0x1e4   : > { %v2028_v36 = vpop.f32.mrf.mxu0  ;;  %v2030_v37 = vpop.f32.mrf.mxu1 }
 0x1e5   : > { %2403 = vst [vmem:[#allocation27_spill] sm:$0xff] %v2030_v37 }
 0x1e6   : > { %v466_v58 = vpop.trf.xlu0 }
 0x1e7   : > { %1355 = vmatmul.msk.f32.gmra.mxu2 %vm476_vm2, %v466_v58  ;;  %1388 = vmatmul.msk.f32.gmra.mxu3 %vm476_vm2, %v466_v58 }
 0x1ec   : > { %v2036_v40 = vpop.f32.mrf.mxu0  ;;  %v2038_v41 = vpop.f32.mrf.mxu1 }
 0x1ed   : > { %2404 = vst [vmem:[#allocation28_spill] sm:$0xff] %v2038_v41 }
 0x1ee   : > { %v467_v61 = vpop.trf.xlu0 }
 0x1ef   : > { %1356 = vmatmul.msk.f32.gmra.mxu2 %vm476_vm2, %v467_v61  ;;  %1389 = vmatmul.msk.f32.gmra.mxu3 %vm476_vm2, %v467_v61  ;;  %v841_v61 = vmax.f32 %v1958_v63, %v1970_v8  ;;  %v300_v63 = vlaneseq }
 0x1f1   : > { %vm2092_vm3 = vcmp.lt.s32.totalorder %v300_v63, 256 }
 0x1f4   : > { %v2044_v44 = vpop.f32.mrf.mxu0  ;;  %v2046_v45 = vpop.f32.mrf.mxu1 }
 0x1f5   : > { %2405 = vst [vmem:[#allocation29_spill] sm:$0xff] %v2044_v44 }
 0x1f6   : > { %v468_v1 = vpop.trf.xlu0  ;;  %2406 = vst [vmem:[#allocation30_spill] sm:$0xff] %v2046_v45 }
 0x1f7   : > { %1357 = vmatmul.msk.f32.gmra.mxu2 %vm476_vm2, %v468_v1  ;;  %1390 = vmatmul.msk.f32.gmra.mxu3 %vm476_vm2, %v468_v1  ;;  %v805_v1 = vmax.f32 %v803_v54, %v1976_v10 }
 0x1f9   : > { %v807_v4 = vmax.f32 %v805_v1, %v1992_v18 }
 0x1fb   : > { %v809_v54 = vmax.f32 %v807_v4, %v2008_v26 }
 0x1fc   : > { %v2056_v50 = vpop.f32.mrf.mxu0  ;;  %v2058_v51 = vpop.f32.mrf.mxu1 }
 0x1fd   : > { %2407 = vst [vmem:[#allocation31_spill] sm:$0xff] %v2056_v50 }
 0x1fe   : > { %v469_v5 = vpop.trf.xlu0  ;;  %2408 = vst [vmem:[#allocation32_spill] sm:$0xff] %v2058_v51 }
 0x1ff   : > { %1358 = vmatmul.msk.f32.gmra.mxu2 %vm476_vm2, %v469_v5  ;;  %1391 = vmatmul.msk.f32.gmra.mxu3 %vm476_vm2, %v469_v5  ;;  %v842_v5 = vmax.f32 %v840_v55, %v1978_v11 }
 0x201   : > { %v844_v60 = vmax.f32 %v842_v5, %v1994_v19  ;;  %v811_v5 = vmax.f32 %v809_v54, %v2028_v36 }
 0x203   : > { %v846_v55 = vmax.f32 %v844_v60, %v2010_v27  ;;  %v813_v4 = vmax.f32 %v811_v5, %v2044_v44 }
 0x204   : > { %v2070_v57 = vpop.f32.mrf.mxu0  ;;  %v2072_v58 = vpop.f32.mrf.mxu1 }
 0x205   : > { %2410 = vst [vmem:[#allocation34_spill] sm:$0xff] %v2070_v57 }
 0x206   : > { %v470_v6 = vpop.trf.xlu0 }
 0x207   : > { %1359 = vmatmul.msk.f32.gmra.mxu2 %vm476_vm2, %v470_v6  ;;  %1392 = vmatmul.msk.f32.gmra.mxu3 %vm476_vm2, %v470_v6  ;;  %v806_v6 = vmax.f32 %v804_v56, %v1984_v14 }
 0x209   : > { %v808_v7 = vmax.f32 %v806_v6, %v2000_v22  ;;  %v848_v6 = vmax.f32 %v846_v55, %v2030_v37  ;;  %v377_v55 = vsel %vm246_vm0, %v1888_v28, 0.0 }
 0x20b   : > { %v810_v56 = vmax.f32 %v808_v7, %v2020_v0  ;;  %v850_v7 = vmax.f32 %v848_v6, %v2046_v45  ;;  %v1760_v6 = vmov 0.0  }
 0x20c   : > { %305 = vst.msk [vmem:[#allocation4] sm:$0x3] %vm2092_vm3, %v1760_v6 }
 0x20d   : > { %v812_v19 = vmax.f32 %v810_v56, %v2036_v40  ;;  %v384_v56 = vsel %vm246_vm0, %v1890_v29, 0.0  ;;  %vm394_vm0 = vcmask 1040384  }
 0x20e   : > { %v471_v9 = vpop.trf.xlu0  ;;  %v385_v45 = vrot.slane %v384_v56, 4 }
 0x20f   : > { %1360 = vmatmul.msk.f32.gmra.mxu2 %vm476_vm2, %v471_v9  ;;  %1393 = vmatmul.msk.f32.gmra.mxu3 %vm476_vm2, %v471_v9  ;;  %v843_v9 = vmax.f32 %v841_v61, %v1986_v15  ;;  %v814_v63 = vmax.f32 %v812_v19, %v2056_v50  ;;  %v378_v19 = vrot.slane %v377_v55, 4 }
 0x211   : > { %v845_v8 = vmax.f32 %v843_v9, %v2002_v23  ;;  %v1759_v9 = vmov -inf  }
 0x212   : > { %304 = vst.msk [vmem:[#allocation3] sm:$0x3] %vm2092_vm3, %v1759_v9 }
 0x213   : > { %v847_v61 = vmax.f32 %v845_v8, %v2022_v2  ;;  %v2105_v8 = vpop.f32.mrf.mxu0  ;;  %v2107_v2 = vpop.f32.mrf.mxu1 }
 0x215   : > { %v849_v60 = vmax.f32 %v847_v61, %v2038_v41  ;;  %v815_v61 = vmax.f32 %v813_v4, %v2070_v57  ;;  %v379_v41 = vadd.f32 %v378_v19, %v377_v55  ;;  %v386_v4 = vadd.f32 %v385_v45, %v384_v56 }
 0x217   : > { %v851_v54 = vmax.f32 %v849_v60, %v2058_v51  ;;  %v852_v60 = vmax.f32 %v850_v7, %v2072_v58  ;;  %v816_v51 = vmax.f32 %v814_v63, %v2105_v8  ;;  %v380_v44 = vrot.slane %v379_v41, 2 }
 0x218   : > { %v387_v27 = vrot.slane %v386_v4, 2 }
 0x219   : > { %v853_v28 = vmax.f32 %v851_v54, %v2107_v2  ;;  %v381_v55 = vadd.f32 %v380_v44, %v379_v41 }
 0x21a   : > { %v1980_v12 = vpop.f32.mrf.mxu2  ;;  %v1982_v13 = vpop.f32.mrf.mxu3  ;;  %v388_v45 = vadd.f32 %v387_v27, %v386_v4 }
 0x21b   : > { %v817_v29 = vmax.f32 %v815_v61, %v1980_v12  ;;  %v854_v57 = vmax.f32 %v852_v60, %v1982_v13 }
 0x222   : > { %v1988_v16 = vpop.f32.mrf.mxu2  ;;  %v1990_v17 = vpop.f32.mrf.mxu3 }
 0x223   : > { %v818_v37 = vmax.f32 %v816_v51, %v1988_v16  ;;  %v855_v50 = vmax.f32 %v853_v28, %v1990_v17 }
 0x22a   : > { %v1996_v20 = vpop.f32.mrf.mxu2  ;;  %v1998_v21 = vpop.f32.mrf.mxu3 }
 0x22b   : > { %v819_v6 = vmax.f32 %v817_v29, %v1996_v20  ;;  %v856_v7 = vmax.f32 %v854_v57, %v1998_v21  ;;  %v382_v57 = vrot.slane %v381_v55, 1 }
 0x22d   : > { %v383_v44 = vadd.f32 %v382_v57, %v381_v55 }
 0x232   : > { %v2004_v24 = vpop.f32.mrf.mxu2  ;;  %v2006_v25 = vpop.f32.mrf.mxu3 }
 0x233   : > { %v820_v63 = vmax.f32 %v818_v37, %v2004_v24  ;;  %v857_v54 = vmax.f32 %v855_v50, %v2006_v25  ;;  %v389_v37 = vrot.slane %v388_v45, 1 }
 0x235   : > { %v390_v4 = vadd.f32 %v389_v37, %v388_v45 }
 0x23a   : > { %v2012_v30 = vpop.f32.mrf.mxu2  ;;  %v2014_v31 = vpop.f32.mrf.mxu3 }
 0x23b   : > { %2400 = vst [vmem:[#allocation24_spill] sm:$0xff] %v2014_v31  ;;  %v821_v61 = vmax.f32 %v819_v6, %v2012_v30  ;;  %v858_v56 = vmax.f32 %v856_v7, %v2014_v31 }
 0x242   : > { %v2016_v32 = vpop.f32.mrf.mxu2  ;;  %v2018_v33 = vpop.f32.mrf.mxu3 }
 0x243   : > { %2401 = vst [vmem:[#allocation25_spill] sm:$0xff] %v2018_v33  ;;  %v822_v51 = vmax.f32 %v820_v63, %v2016_v32  ;;  %v859_v19 = vmax.f32 %v857_v54, %v2018_v33  ;;  %v393_v33 = vrot.slane %v390_v4, 7 }
 0x24a   : > { %v2024_v34 = vpop.f32.mrf.mxu2  ;;  %v2026_v35 = vpop.f32.mrf.mxu3 }
 0x24b   : > { %v823_v60 = vmax.f32 %v821_v61, %v2024_v34  ;;  %v860_v50 = vmax.f32 %v858_v56, %v2026_v35 }
 0x252   : > { %v2032_v38 = vpop.f32.mrf.mxu2  ;;  %v2034_v39 = vpop.f32.mrf.mxu3 }
 0x253   : > { %v824_v6 = vmax.f32 %v822_v51, %v2032_v38  ;;  %v861_v27 = vmax.f32 %v859_v19, %v2034_v39  ;;  %v395_v19 = vsel %vm394_vm0, %v383_v44, %v393_v33 }
 0x254   : > { %401 = vst.msk [vmem:[#allocation5] sm:$0x3] %vm2092_vm3, %v395_v19 }
 0x25a   : > { %v2040_v42 = vpop.f32.mrf.mxu2  ;;  %v2042_v43 = vpop.f32.mrf.mxu3 }
 0x25b   : > { %v825_v41 = vmax.f32 %v823_v60, %v2040_v42  ;;  %v862_v7 = vmax.f32 %v860_v50, %v2042_v43 }
 0x262   : > { %v2048_v46 = vpop.f32.mrf.mxu2  ;;  %v2050_v47 = vpop.f32.mrf.mxu3 }
 0x263   : > { %v826_v63 = vmax.f32 %v824_v6, %v2048_v46  ;;  %v863_v54 = vmax.f32 %v861_v27, %v2050_v47 }
 0x26a   : > { %v2052_v48 = vpop.f32.mrf.mxu2  ;;  %v2054_v49 = vpop.f32.mrf.mxu3 }
 0x26b   : > { %v827_v61 = vmax.f32 %v825_v41, %v2052_v48  ;;  %v864_v31 = vmax.f32 %v862_v7, %v2054_v49 }
 0x272   : > { %v2060_v52 = vpop.f32.mrf.mxu2  ;;  %v2062_v53 = vpop.f32.mrf.mxu3 }
 0x273   : > { %2409 = vst [vmem:[#allocation33_spill] sm:$0xff] %v2062_v53  ;;  %v828_v56 = vmax.f32 %v826_v63, %v2060_v52  ;;  %v865_v51 = vmax.f32 %v863_v54, %v2062_v53 }
 0x27a   : > { %v2083_v3 = vpop.f32.mrf.mxu2  ;;  %v2085_v62 = vpop.f32.mrf.mxu3 }
 0x27b   : > { %2411 = vst [vmem:[#allocation35_spill] sm:$0xff] %v2085_v62  ;;  %v829_v55 = vmax.f32 %v827_v61, %v2083_v3  ;;  %v866_v45 = vmax.f32 %v864_v31, %v2085_v62 }
 0x282   : > { %v2115_v9 = vpop.f32.mrf.mxu2  ;;  %v2117_v5 = vpop.f32.mrf.mxu3 }
 0x283   : > { %2414 = vst [vmem:[#allocation36_spill] sm:$0xff] %v2117_v5  ;;  %v830_v60 = vmax.f32 %v828_v56, %v2115_v9  ;;  %v867_v57 = vmax.f32 %v865_v51, %v2117_v5 }
 0x28a   : > { %v2137_v28 = vpop.f32.mrf.mxu2  ;;  %v2139_v29 = vpop.f32.mrf.mxu3 }
 0x28b   : > { %2415 = vst [vmem:[#allocation37_spill] sm:$0xff] %v2137_v28  ;;  %v831_v6 = vmax.f32 %v829_v55, %v2137_v28  ;;  %v868_v27 = vmax.f32 %v866_v45, %v2139_v29  ;;  %v2167_v28 = vld [vmem:[#allocation3] sm:$0x3] }
 0x292   : > { %v2159_v37 = vpop.f32.mrf.mxu2  ;;  %v2161_v50 = vpop.f32.mrf.mxu3 }
 0x293   : > { %v832_v33 = vmax.f32 %v830_v60, %v2159_v37  ;;  %v869_v41 = vmax.f32 %v867_v57, %v2161_v50 }
 0x295   : > { %v833_v31 = vmax.f32 %v831_v6, %v832_v33  ;;  %v870_v44 = vmax.f32 %v868_v27, %v869_v41 }
 0x297   : > { %v834_v4 = vrot.slane %v833_v31, 4  ;;  %v871_v7 = vrot.slane %v870_v44, 4 }
 0x299   : > { %v835_v63 = vmax.f32 %v833_v31, %v834_v4  ;;  %v872_v54 = vmax.f32 %v870_v44, %v871_v7  ;;  %v2417_v31 = vld [vmem:[#allocation18_spill] sm:$0xff]  ;;  %v2418_v7 = vld [vmem:[#allocation15_spill] sm:$0xff] }
 0x29b   : > { %v836_v61 = vrot.slane %v835_v63, 2  ;;  %v873_v56 = vrot.slane %v872_v54, 2 }
 0x29d   : > { %v837_v51 = vmax.f32 %v835_v63, %v836_v61  ;;  %v874_v19 = vmax.f32 %v872_v54, %v873_v56  ;;  %v2419_v54 = vld [vmem:[#allocation20_spill] sm:$0xff]  ;;  %v2420_v56 = vld [vmem:[#allocation17_spill] sm:$0xff] }
 0x29f   : > { %v838_v5 = vrot.slane %v837_v51, 1  ;;  %v875_v62 = vrot.slane %v874_v19, 1 }
 0x2a1   : > { %v876_v53 = vmax.f32 %v874_v19, %v875_v62  ;;  %v839_v55 = vmax.f32 %v837_v51, %v838_v5 }
 0x2a3   : > { %v880_v45 = vrot.slane %v876_v53, 7  ;;  %v2416_v53 = vld [vmem:[#allocation16_spill] sm:$0xff] }
 0x2a5   : > { %v882_v60 = vsel %vm394_vm0, %v839_v55, %v880_v45 }
 0x2a6   : > { %v2171_v57 = vmax.f32 %v2167_v28, %v882_v60 }
 0x2a8   : > { %v886_v6 = vsub.f32 %v2167_v28, %v2171_v57  ;;  %1172 = vst.msk [vmem:[#allocation3] sm:$0x3] %vm2092_vm3, %v2171_v57  ;;  %v2179_v27 = vperm.slane %v2171_v57, 0  ;;  %v2186_v33 = vperm.slane %v2171_v57, 1 }
 0x2aa   : > { %v895_v62 = vsub.f32 %v1950_v59, %v2179_v27  ;;  %v897_v5 = vsub.f32 %v2416_v53, %v2179_v27  ;;  %v899_v44 = vsub.f32 %v2417_v31, %v2179_v27  ;;  %v896_v63 = vsub.f32 %v2418_v7, %v2186_v33 }
 0x2ab   : > { %v901_v61 = vsub.f32 %v2419_v54, %v2179_v27  ;;  %v898_v59 = vsub.f32 %v2420_v56, %v2186_v33  ;;  %v903_v51 = vsub.f32 %v1976_v10, %v2179_v27  ;;  %v905_v45 = vsub.f32 %v1984_v14, %v2179_v27  ;;  %v2422_v54 = vld [vmem:[#allocation21_spill] sm:$0xff] }
 0x2ac   : > { %v959_v41 = vmul.f32 1.442695, %v895_v62  ;;  %v963_v4 = vmul.f32 1.442695, %v897_v5  ;;  %v967_v19 = vmul.f32 1.442695, %v899_v44  ;;  %v907_v31 = vsub.f32 %v1992_v18, %v2179_v27 }
 0x2ad   : > { %v961_v55 = vmul.f32 1.442695, %v896_v63  ;;  %v971_v60 = vmul.f32 1.442695, %v901_v61  ;;  %v2421_v62 = vld [vmem:[#allocation19_spill] sm:$0xff]  ;;  %v902_v10 = vsub.f32 %v2422_v54, %v2186_v33  ;;  %v904_v63 = vsub.f32 %v1978_v11, %v2186_v33  ;;  %v2423_v11 = vld [vmem:[#allocation22_spill] sm:$0xff] }
 0x2ae   : > { %1479 = vpow2.f32 %v959_v41  ;;  %v900_v53 = vsub.f32 %v2421_v62, %v2186_v33  ;;  %v965_v5 = vmul.f32 1.442695, %v898_v59  ;;  %v975_v7 = vmul.f32 1.442695, %v903_v51 }
 0x2af   : > { %1481 = vpow2.f32 %v963_v4  ;;  %v909_v4 = vsub.f32 %v2000_v22, %v2179_v27  ;;  %v979_v14 = vmul.f32 1.442695, %v905_v45  ;;  %v911_v18 = vsub.f32 %v2008_v26, %v2179_v27 }
 0x2b0   : > { %1483 = vpow2.f32 %v967_v19  ;;  %v969_v61 = vmul.f32 1.442695, %v900_v53  ;;  %v983_v56 = vmul.f32 1.442695, %v907_v31  ;;  %v906_v59 = vsub.f32 %v1986_v15, %v2186_v33 }
 0x2b1   : > { %1485 = vpow2.f32 %v961_v55  ;;  %v973_v51 = vmul.f32 1.442695, %v902_v10  ;;  %v913_v22 = vsub.f32 %v2020_v0, %v2179_v27  ;;  %v987_v45 = vmul.f32 1.442695, %v909_v4 }
 0x2b2   : > { %1487 = vpow2.f32 %v971_v60  ;;  %v908_v62 = vsub.f32 %v2423_v11, %v2186_v33  ;;  %v977_v53 = vmul.f32 1.442695, %v904_v63  ;;  %v915_v31 = vsub.f32 %v2028_v36, %v2179_v27 }
 0x2b3   : > { %1489 = vpow2.f32 %v965_v5  ;;  %v991_v15 = vmul.f32 1.442695, %v911_v18  ;;  %v981_v0 = vmul.f32 1.442695, %v906_v59  ;;  %v995_v4 = vmul.f32 1.442695, %v913_v22 }
 0x2b4   : > { %v1480_v41 = vpop.eup %1479  ;;  %1491 = vpow2.f32 %v975_v7  ;;  %v985_v36 = vmul.f32 1.442695, %v908_v62 }
 0x2b5   : > { %v1482_v44 = vpop.eup %1481  ;;  %1493 = vpow2.f32 %v979_v14  ;;  %v2424_v14 = vld [vmem:[#allocation23_spill] sm:$0xff] }
 0x2b6   : > { %v1087_v19 = vadd.f32 %v1482_v44, %v1480_v41  ;;  %v1484_v55 = vpop.eup %1483  ;;  %1495 = vpow2.f32 %v969_v61  ;;  %v910_v41 = vsub.f32 %v2002_v23, %v2186_v33  ;;  %v917_v44 = vsub.f32 %v2036_v40, %v2179_v27 }
 0x2b7   : > { %v1486_v60 = vpop.eup %1485  ;;  %1497 = vpow2.f32 %v983_v56  ;;  %v912_v63 = vsub.f32 %v2424_v14, %v2186_v33  ;;  %v2425_v56 = vld [vmem:[#allocation29_spill] sm:$0xff]  ;;  %v999_v23 = vmul.f32 1.442695, %v915_v31  ;;  %v2429_v14 = vld [vmem:[#allocation34_spill] sm:$0xff] }
 0x2b8   : > { %v1088_v26 = vadd.f32 %v1484_v55, %v1087_v19  ;;  %v1488_v5 = vpop.eup %1487  ;;  %1499 = vpow2.f32 %v973_v51  ;;  %v919_v19 = vsub.f32 %v2425_v56, %v2179_v27  ;;  %v2426_v55 = vld [vmem:[#allocation26_spill] sm:$0xff]  ;;  %v989_v40 = vmul.f32 1.442695, %v910_v41  ;;  %v2430_v56 = vld [vmem:[#allocation28_spill] sm:$0xff] }
 0x2b9   : > { %v1490_v7 = vpop.eup %1489  ;;  %1501 = vpow2.f32 %v987_v45  ;;  %v914_v11 = vsub.f32 %v2426_v55, %v2186_v33  ;;  %v1003_v62 = vmul.f32 1.442695, %v917_v44 }
 0x2ba   : > { %v1089_v54 = vadd.f32 %v1488_v5, %v1088_v26  ;;  %v1492_v10 = vpop.eup %1491  ;;  %1503 = vpow2.f32 %v977_v53  ;;  %v1124_v59 = vadd.f32 %v1490_v7, %v1486_v60  ;;  %v2427_v26 = vld [vmem:[#allocation31_spill] sm:$0xff]  ;;  %v993_v60 = vmul.f32 1.442695, %v912_v63 }
 0x2bb   : > { %v1494_v18 = vpop.eup %1493  ;;  %1505 = vpow2.f32 %v991_v15  ;;  %v921_v53 = vsub.f32 %v2427_v26, %v2179_v27  ;;  %v1007_v41 = vmul.f32 1.442695, %v919_v19  ;;  %v997_v44 = vmul.f32 1.442695, %v914_v11 }
 0x2bc   : > { %v1090_v61 = vadd.f32 %v1492_v10, %v1089_v54  ;;  %v1496_v51 = vpop.eup %1495  ;;  %1507 = vpow2.f32 %v981_v0  ;;  %v2428_v10 = vld [vmem:[#allocation27_spill] sm:$0xff]  ;;  %v923_v0 = vsub.f32 %v2429_v14, %v2179_v27 }
 0x2bd   : > { %v1498_v45 = vpop.eup %1497  ;;  %1509 = vpow2.f32 %v995_v4  ;;  %v1125_v5 = vadd.f32 %v1496_v51, %v1124_v59  ;;  %v916_v15 = vsub.f32 %v2428_v10, %v2186_v33  ;;  %v918_v4 = vsub.f32 %v2430_v56, %v2186_v33 }
 0x2be   : > { %v1091_v22 = vadd.f32 %v1494_v18, %v1090_v61  ;;  %v1500_v54 = vpop.eup %1499  ;;  %1511 = vpow2.f32 %v985_v36  ;;  %v925_v36 = vsub.f32 %v2105_v8, %v2179_v27  ;;  %v1011_v63 = vmul.f32 1.442695, %v921_v53  ;;  %v2432_v8 = vld [vmem:[#allocation32_spill] sm:$0xff] }
 0x2bf   : > { %v1502_v7 = vpop.eup %1501  ;;  %1513 = vpow2.f32 %v999_v23  ;;  %v1126_v61 = vadd.f32 %v1500_v54, %v1125_v5  ;;  %v1001_v19 = vmul.f32 1.442695, %v916_v15  ;;  %v1015_v11 = vmul.f32 1.442695, %v923_v0 }
 0x2c0   : > { %v1092_v31 = vadd.f32 %v1498_v45, %v1091_v22  ;;  %v1504_v18 = vpop.eup %1503  ;;  %1515 = vpow2.f32 %v989_v40  ;;  %v2431_v45 = vld [vmem:[#allocation30_spill] sm:$0xff]  ;;  %v927_v40 = vsub.f32 %v1980_v12, %v2179_v27  ;;  %v1005_v53 = vmul.f32 1.442695, %v918_v4 }
 0x2c1   : > { %v1506_v51 = vpop.eup %1505  ;;  %1517 = vpow2.f32 %v1003_v62  ;;  %v1127_v55 = vadd.f32 %v1504_v18, %v1126_v61  ;;  %v920_v23 = vsub.f32 %v2431_v45, %v2186_v33  ;;  %v922_v62 = vsub.f32 %v2432_v8, %v2186_v33 }
 0x2c2   : > { %v1093_v59 = vadd.f32 %v1502_v7, %v1092_v31  ;;  %v1508_v22 = vpop.eup %1507  ;;  %1519 = vpow2.f32 %v993_v60  ;;  %v929_v60 = vsub.f32 %v1988_v16, %v2179_v27  ;;  %v1019_v15 = vmul.f32 1.442695, %v925_v36 }
 0x2c3   : > { %v1510_v5 = vpop.eup %1509  ;;  %1521 = vpow2.f32 %v1007_v41  ;;  %v1128_v54 = vadd.f32 %v1508_v22, %v1127_v55  ;;  %v924_v12 = vsub.f32 %v2072_v58, %v2186_v33  ;;  %v1009_v0 = vmul.f32 1.442695, %v920_v23 }
 0x2c4   : > { %v1094_v26 = vadd.f32 %v1506_v51, %v1093_v59  ;;  %v1512_v10 = vpop.eup %1511  ;;  %1523 = vpow2.f32 %v997_v44  ;;  %v931_v56 = vsub.f32 %v1996_v20, %v2179_v27  ;;  %v1023_v4 = vmul.f32 1.442695, %v927_v40 }
 0x2c5   : > { %v1514_v7 = vpop.eup %1513  ;;  %1525 = vpow2.f32 %v1011_v63  ;;  %v1129_v14 = vadd.f32 %v1512_v10, %v1128_v54  ;;  %v926_v16 = vsub.f32 %v2107_v2, %v2186_v33  ;;  %v1013_v51 = vmul.f32 1.442695, %v922_v62 }
 0x2c6   : > { %v1095_v31 = vadd.f32 %v1510_v5, %v1094_v26  ;;  %v1516_v61 = vpop.eup %1515  ;;  %1527 = vpow2.f32 %v1001_v19  ;;  %v933_v58 = vsub.f32 %v2004_v24, %v2179_v27  ;;  %v1027_v55 = vmul.f32 1.442695, %v929_v60 }
 0x2c7   : > { %v1518_v18 = vpop.eup %1517  ;;  %1529 = vpow2.f32 %v1015_v11  ;;  %v1130_v44 = vadd.f32 %v1516_v61, %v1129_v14  ;;  %v928_v20 = vsub.f32 %v1982_v13, %v2186_v33  ;;  %v1017_v23 = vmul.f32 1.442695, %v924_v12 }
 0x2c8   : > { %v1096_v41 = vadd.f32 %v1514_v7, %v1095_v31  ;;  %v1520_v59 = vpop.eup %1519  ;;  %1531 = vpow2.f32 %v1005_v53  ;;  %v935_v2 = vsub.f32 %v2012_v30, %v2179_v27  ;;  %v1031_v5 = vmul.f32 1.442695, %v931_v56 }
 0x2c9   : > { %v1522_v63 = vpop.eup %1521  ;;  %1533 = vpow2.f32 %v1019_v15  ;;  %v1131_v22 = vadd.f32 %v1520_v59, %v1130_v44  ;;  %v930_v24 = vsub.f32 %v1990_v17, %v2186_v33  ;;  %v1021_v54 = vmul.f32 1.442695, %v926_v16 }
 0x2ca   : > { %v1097_v36 = vadd.f32 %v1518_v18, %v1096_v41  ;;  %v1524_v45 = vpop.eup %1523  ;;  %1535 = vpow2.f32 %v1009_v0  ;;  %v937_v13 = vsub.f32 %v2016_v32, %v2179_v27  ;;  %v1035_v62 = vmul.f32 1.442695, %v933_v58 }
 0x2cb   : > { %v1526_v26 = vpop.eup %1525  ;;  %1537 = vpow2.f32 %v1023_v4  ;;  %v1132_v40 = vadd.f32 %v1524_v45, %v1131_v22  ;;  %v932_v30 = vsub.f32 %v1998_v21, %v2186_v33  ;;  %v1025_v7 = vmul.f32 1.442695, %v928_v20 }
 0x2cc   : > { %v1098_v19 = vadd.f32 %v1522_v63, %v1097_v36  ;;  %v1528_v11 = vpop.eup %1527  ;;  %1539 = vpow2.f32 %v1013_v51  ;;  %v939_v17 = vsub.f32 %v2024_v34, %v2179_v27  ;;  %v1039_v14 = vmul.f32 1.442695, %v935_v2  ;;  %v2433_v34 = vld [vmem:[#allocation24_spill] sm:$0xff] }
 0x2cd   : > { %v1530_v8 = vpop.eup %1529  ;;  %1541 = vpow2.f32 %v1027_v55  ;;  %v1133_v53 = vadd.f32 %v1528_v11, %v1132_v40  ;;  %v934_v32 = vsub.f32 %v2006_v25, %v2186_v33  ;;  %v1029_v0 = vmul.f32 1.442695, %v930_v24 }
 0x2ce   : > { %v1099_v10 = vadd.f32 %v1526_v26, %v1098_v19  ;;  %v1532_v31 = vpop.eup %1531  ;;  %1543 = vpow2.f32 %v1017_v23  ;;  %v941_v21 = vsub.f32 %v2032_v38, %v2179_v27  ;;  %v1043_v56 = vmul.f32 1.442695, %v937_v13  ;;  %v2434_v38 = vld [vmem:[#allocation25_spill] sm:$0xff] }
 0x2cf   : > { %v1534_v15 = vpop.eup %1533  ;;  %1545 = vpow2.f32 %v1031_v5  ;;  %v1134_v61 = vadd.f32 %v1532_v31, %v1133_v53  ;;  %v936_v59 = vsub.f32 %v2433_v34, %v2186_v33  ;;  %v1033_v16 = vmul.f32 1.442695, %v932_v30 }
 0x2d0   : > { %v1100_v60 = vadd.f32 %v1530_v8, %v1099_v10  ;;  %v1536_v12 = vpop.eup %1535  ;;  %1547 = vpow2.f32 %v1021_v54  ;;  %v943_v25 = vsub.f32 %v2040_v42, %v2179_v27  ;;  %v1047_v63 = vmul.f32 1.442695, %v939_v17 }
 0x2d1   : > { %v1538_v18 = vpop.eup %1537  ;;  %1549 = vpow2.f32 %v1035_v62  ;;  %v1135_v4 = vadd.f32 %v1536_v12, %v1134_v61  ;;  %v938_v22 = vsub.f32 %v2434_v38, %v2186_v33  ;;  %v1037_v45 = vmul.f32 1.442695, %v934_v32 }
 0x2d2   : > { %v1101_v41 = vadd.f32 %v1534_v15, %v1100_v60  ;;  %v1540_v44 = vpop.eup %1539  ;;  %1551 = vpow2.f32 %v1025_v7  ;;  %v945_v19 = vsub.f32 %v2048_v46, %v2179_v27  ;;  %v1051_v26 = vmul.f32 1.442695, %v941_v21 }
 0x2d3   : > { %v1542_v36 = vpop.eup %1541  ;;  %1553 = vpow2.f32 %v1039_v14  ;;  %v1136_v58 = vadd.f32 %v1540_v44, %v1135_v4  ;;  %v940_v42 = vsub.f32 %v2026_v35, %v2186_v33  ;;  %v1041_v40 = vmul.f32 1.442695, %v936_v59 }
 0x2d4   : > { %v1102_v51 = vadd.f32 %v1538_v18, %v1101_v41  ;;  %v1544_v55 = vpop.eup %1543  ;;  %1555 = vpow2.f32 %v1029_v0  ;;  %v947_v54 = vsub.f32 %v2052_v48, %v2179_v27  ;;  %v1055_v10 = vmul.f32 1.442695, %v943_v25 }
 0x2d5   : > { %v1546_v23 = vpop.eup %1545  ;;  %1557 = vpow2.f32 %v1043_v56  ;;  %v1137_v2 = vadd.f32 %v1544_v55, %v1136_v58  ;;  %v942_v46 = vsub.f32 %v2034_v39, %v2186_v33  ;;  %v1045_v62 = vmul.f32 1.442695, %v938_v22 }
 0x2d6   : > { %v1103_v20 = vadd.f32 %v1542_v36, %v1102_v51  ;;  %v1548_v5 = vpop.eup %1547  ;;  %1559 = vpow2.f32 %v1033_v16  ;;  %v949_v35 = vsub.f32 %v2060_v52, %v2179_v27  ;;  %v1059_v30 = vmul.f32 1.442695, %v945_v19 }
 0x2d7   : > { %v1550_v24 = vpop.eup %1549  ;;  %1561 = vpow2.f32 %v1047_v63  ;;  %v1138_v8 = vadd.f32 %v1548_v5, %v1137_v2  ;;  %v944_v48 = vsub.f32 %v2042_v43, %v2186_v33  ;;  %v1049_v15 = vmul.f32 1.442695, %v940_v42 }
 0x2d8   : > { %v1104_v11 = vadd.f32 %v1546_v23, %v1103_v20  ;;  %v1552_v13 = vpop.eup %1551  ;;  %1563 = vpow2.f32 %v1037_v45  ;;  %v951_v39 = vsub.f32 %v2083_v3, %v2179_v27  ;;  %v1063_v61 = vmul.f32 1.442695, %v947_v54  ;;  %v2437_v23 = vld [vmem:[#allocation35_spill] sm:$0xff] }
 0x2d9   : > { %v1554_v31 = vpop.eup %1553  ;;  %1565 = vpow2.f32 %v1051_v26  ;;  %v1139_v7 = vadd.f32 %v1552_v13, %v1138_v8  ;;  %v946_v52 = vsub.f32 %v2050_v47, %v2186_v33  ;;  %v1053_v0 = vmul.f32 1.442695, %v942_v46  ;;  %v2435_v47 = vld [vmem:[#allocation37_spill] sm:$0xff] }
 0x2da   : > { %v1105_v53 = vadd.f32 %v1550_v24, %v1104_v11  ;;  %v1556_v60 = vpop.eup %1555  ;;  %1567 = vpow2.f32 %v1041_v40  ;;  %v953_v43 = vsub.f32 %v2115_v9, %v2179_v27  ;;  %v1067_v21 = vmul.f32 1.442695, %v949_v35  ;;  %v2436_v9 = vld [vmem:[#allocation33_spill] sm:$0xff]  ;;  %v2438_v24 = vld [vmem:[#allocation36_spill] sm:$0xff] }
 0x2db   : > { %v1558_v14 = vpop.eup %1557  ;;  %1569 = vpow2.f32 %v1055_v10  ;;  %v1140_v12 = vadd.f32 %v1556_v60, %v1139_v7  ;;  %v948_v3 = vsub.f32 %v2054_v49, %v2186_v33  ;;  %v1057_v44 = vmul.f32 1.442695, %v944_v48 }
 0x2dc   : > { %v1106_v17 = vadd.f32 %v1554_v31, %v1105_v53  ;;  %v1560_v32 = vpop.eup %1559  ;;  %1571 = vpow2.f32 %v1045_v62  ;;  %v955_v16 = vsub.f32 %v2435_v47, %v2179_v27  ;;  %v1071_v51 = vmul.f32 1.442695, %v951_v39 }
 0x2dd   : > { %v1562_v18 = vpop.eup %1561  ;;  %1573 = vpow2.f32 %v1059_v30  ;;  %v1141_v56 = vadd.f32 %v1560_v32, %v1140_v12  ;;  %v950_v63 = vsub.f32 %v2436_v9, %v2186_v33  ;;  %v1061_v58 = vmul.f32 1.442695, %v946_v52 }
 0x2de   : > { %v1107_v41 = vadd.f32 %v1558_v14, %v1106_v17  ;;  %v1564_v4 = vpop.eup %1563  ;;  %1575 = vpow2.f32 %v1049_v15  ;;  %v957_v49 = vsub.f32 %v2159_v37, %v2179_v27  ;;  %v1075_v22 = vmul.f32 1.442695, %v953_v43 }
 0x2df   : > { %v1566_v59 = vpop.eup %1565  ;;  %1577 = vpow2.f32 %v1063_v61  ;;  %v1142_v36 = vadd.f32 %v1564_v4, %v1141_v56  ;;  %v952_v19 = vsub.f32 %v2437_v23, %v2186_v33  ;;  %v1065_v26 = vmul.f32 1.442695, %v948_v3 }
 0x2e0   : > { %v1108_v34 = vadd.f32 %v1562_v18, %v1107_v41  ;;  %v1568_v25 = vpop.eup %1567  ;;  %1579 = vpow2.f32 %v1053_v0  ;;  %v1079_v42 = vmul.f32 1.442695, %v955_v16  ;;  %v954_v54 = vsub.f32 %v2438_v24, %v2186_v33 }
 0x2e1   : > { %v1570_v38 = vpop.eup %1569  ;;  %1581 = vpow2.f32 %v1067_v21  ;;  %v1143_v45 = vadd.f32 %v1568_v25, %v1142_v36  ;;  %v1069_v37 = vmul.f32 1.442695, %v950_v63  ;;  %v1083_v8 = vmul.f32 1.442695, %v957_v49 }
 0x2e2   : > { %v1109_v55 = vadd.f32 %v1566_v59, %v1108_v34  ;;  %v1572_v20 = vpop.eup %1571  ;;  %1583 = vpow2.f32 %v1057_v44  ;;  %v956_v62 = vsub.f32 %v2139_v29, %v2186_v33  ;;  %v1073_v53 = vmul.f32 1.442695, %v952_v19 }
 0x2e3   : > { %v1574_v5 = vpop.eup %1573  ;;  %1585 = vpow2.f32 %v1071_v51  ;;  %v1144_v40 = vadd.f32 %v1572_v20, %v1143_v45  ;;  %v958_v60 = vsub.f32 %v2161_v50, %v2186_v33  ;;  %v1077_v48 = vmul.f32 1.442695, %v954_v54  ;;  %v1176_v54 = vld [vmem:[#allocation3] sm:$0x3] }
 0x2e4   : > { %v1110_v2 = vadd.f32 %v1570_v38, %v1109_v55  ;;  %v1576_v11 = vpop.eup %1575  ;;  %1587 = vpow2.f32 %v1061_v58  ;;  %v1081_v61 = vmul.f32 1.442695, %v956_v62  ;;  %v887_v63 = vmul.f32 1.442695, %v886_v6 }
 0x2e5   : > { %v1578_v10 = vpop.eup %1577  ;;  %1589 = vpow2.f32 %v1075_v22  ;;  %v1145_v13 = vadd.f32 %v1576_v11, %v1144_v40  ;;  %v1085_v0 = vmul.f32 1.442695, %v958_v60 }
 0x2e6   : > { %v1111_v27 = vadd.f32 %v1574_v5, %v1110_v2  ;;  %v1580_v46 = vpop.eup %1579  ;;  %1591 = vpow2.f32 %v1065_v26  ;;  %v885_v26 = vld [vmem:[#allocation4] sm:$0x3] }
 0x2e7   : > { %v1582_v35 = vpop.eup %1581  ;;  %1593 = vpow2.f32 %v1079_v42  ;;  %v1146_v30 = vadd.f32 %v1580_v46, %v1145_v13 }
 0x2e8   : > { %v1112_v31 = vadd.f32 %v1578_v10, %v1111_v27  ;;  %v1584_v7 = vpop.eup %1583  ;;  %1595 = vpow2.f32 %v1069_v37  ;;  %v1181_v37 = vld [vmem:[#allocation5] sm:$0x3] }
 0x2e9   : > { %v1586_v17 = vpop.eup %1585  ;;  %1597 = vpow2.f32 %v1083_v8  ;;  %v1147_v14 = vadd.f32 %v1584_v7, %v1146_v30 }
 0x2ea   : > { %v1113_v15 = vadd.f32 %v1582_v35, %v1112_v31  ;;  %v1588_v39 = vpop.eup %1587  ;;  %1599 = vpow2.f32 %v1073_v53 }
 0x2eb   : > { %v1590_v12 = vpop.eup %1589  ;;  %v1148_v32 = vadd.f32 %v1588_v39, %v1147_v14  ;;  %1601 = vpow2.f32 %v1077_v48 }
 0x2ec   : > { %v1114_v29 = vadd.f32 %v1586_v17, %v1113_v15  ;;  %v1592_v52 = vpop.eup %1591  ;;  %1603 = vpow2.f32 %v1081_v61 }
 0x2ed   : > { %v1594_v18 = vpop.eup %1593  ;;  %v1149_v43 = vadd.f32 %v1592_v52, %v1148_v32  ;;  %1605 = vpow2.f32 %v1085_v0 }
 0x2ee   : > { %v1115_v41 = vadd.f32 %v1590_v12, %v1114_v29  ;;  %v1596_v21 = vpop.eup %1595  ;;  %1607 = vpow2.f32 %v887_v63 }
 0x2ef   : > { %v1598_v33 = vpop.eup %1597  ;;  %v1150_v56 = vadd.f32 %v1596_v21, %v1149_v43 }
 0x2f0   : > { %v1116_v50 = vadd.f32 %v1594_v18, %v1115_v41  ;;  %v1600_v4 = vpop.eup %1599 }
 0x2f1   : > { %v1151_v44 = vadd.f32 %v1600_v4, %v1150_v56  ;;  %v1602_v34 = vpop.eup %1601 }
 0x2f2   : > { %v1117_v3 = vadd.f32 %v1598_v33, %v1116_v50  ;;  %v1604_v16 = vpop.eup %1603 }
 0x2f3   : > { %v1152_v47 = vadd.f32 %v1602_v34, %v1151_v44  ;;  %v1606_v25 = vpop.eup %1605 }
 0x2f4   : > { %v1118_v59 = vrot.slane %v1117_v3, 4  ;;  %v1608_v19 = vpop.eup %1607 }
 0x2f5   : > { %v1153_v36 = vadd.f32 %v1604_v16, %v1152_v47  ;;  %v889_v40 = vmul.f32 %v1608_v19, %v885_v26 }
 0x2f6   : > { %v1119_v51 = vadd.f32 %v1118_v59, %v1117_v3 }
 0x2f7   : > { %v1154_v9 = vadd.f32 %v1606_v25, %v1153_v36 }
 0x2f8   : > { %v1120_v58 = vrot.slane %v1119_v51, 2 }
 0x2f9   : > { %v1155_v55 = vrot.slane %v1154_v9, 4 }
 0x2fa   : > { %v1121_v49 = vadd.f32 %v1120_v58, %v1119_v51 }
 0x2fb   : > { %v1156_v38 = vadd.f32 %v1155_v55, %v1154_v9 }
 0x2fc   : > { %v1122_v20 = vrot.slane %v1121_v49, 1 }
 0x2fd   : > { %v1157_v22 = vrot.slane %v1156_v38, 2 }
 0x2fe   : > { %v1123_v5 = vadd.f32 %v1122_v20, %v1121_v49 }
 0x2ff   : > { %v1158_v45 = vadd.f32 %v1157_v22, %v1156_v38 }
 0x301   : > { %v1159_v23 = vrot.slane %v1158_v45, 1 }
 0x303   : > { %v1160_v2 = vadd.f32 %v1159_v23, %v1158_v45 }
 0x305   : > { %v1163_v42 = vrot.slane %v1160_v2, 7 }
 0x307   : > { %v1164_v28 = vsel %vm394_vm0, %v1123_v5, %v1163_v42 }
 0x308   : > { %v1166_v57 = vadd.f32 %v1164_v28, %v889_v40 }
 0x30a   : > { %1171 = vst.msk [vmem:[#allocation4] sm:$0x3] %vm2092_vm3, %v1166_v57 }
 0x311   : > { %v1177_v6 = vld [vmem:[#allocation4] sm:$0x3] }
 0x312   : > { %1609 = vlog2.f32 %v1177_v6 }
 0x318   : > { %v1610_v11 = vpop.eup %1609 }
 0x319   : > { %v1179_v24 = vmul.f32 0.6931472, %v1610_v11 }
 0x31b   : > { %v1180_v27 = vadd.f32 %v1179_v24, %v1176_v54 }
 0x31d   : > { %v1182_v10 = vsub.f32 %v1180_v27, %v1181_v37 }
 0x31f   : > { %1183 = vst.msk [vmem:[%s230_s7] sm:$0x3] %vm2092_vm3, %v1182_v10 }
 0x320   : > { %1698 = shalt.err (!%p1695_p13)
}
 0x321   : > { %1406 = dma.vmem_to_hbm [thread:$0]  (%p1827_p9), %s1200_s8, 32, %s1202_s15, %s1185_s12  }
 0x322 PF: > { %s1213_s19 = sand.u32 1, %s1737_s9   ;;  %p1416_p0 = pnand %p1317_p12, %p1834_p11 }
 0x323   : > { %s1214_s26 = scalar_lea.sflag [#allocation8], %s1213_s19 }
 0x324   : > { %p1417_p1 = pneg %p1416_p0 }
 0x326   : > { %1732 = dma.done.wait (%p1417_p1), %s1214_s26, 32  }
 0x327   : > { %1734 = vsyncadd (%p1417_p1), %s1214_s26, 4294967264  ;;  %s21_s14 = sadd.s32 1, %s1757_s14   ;;  %s2439_s9 = smov %s1741_s10 }
 0x328   : > { %p18_p2 = scmp.ge.s32.totalorder %s21_s14, 4   ;;  %s2440_s10 = smov %s1745_s11 }
 0x329   : > { %s2441_s11 = smov %s1832_s23  ;;  %s2442_s12 = smov %s1753_s13 }
 0x32a   : > { %s2443_s13 = smov %s2445_s17  ;;  %20 = sbr.rel (!%p18_p2) target bundleno = 8 (0x8), region = 98 }
 0x32f   :  { %1220 = vsyncpa [#allocation7], 1 }
 0x330   :  { %1222 = vsyncpa [#allocation7 + $0x1], 1 }
 0x331   :  { %1223 = vsyncpa [#allocation10], 1 }
 0x332   :  { %1225 = vsyncpa [#allocation10 + $0x1], 1 }
 0x333   :  { %1226 = vsyncpa [#allocation8], 1 }
 0x334   :  { %1228 = vsyncpa [#allocation8 + $0x1], 1 }

</bundles_post_ra>
